<compile_context>
chip_gen: v7x
topology: tpu7x:2x2x1
jax: 0.10.0
libtpu: 0.0.40
codegen_flags: <defaults>
</compile_context>

<pallas_src>
import functools

import jax
import jax.numpy as jnp
from jax.experimental import pallas as pl
from jax.experimental.pallas import tpu as pltpu


# ----------------------------------------------------------------------------
# Tiling helpers
# ----------------------------------------------------------------------------
def _round_up(x, m):
    return ((x + m - 1) // m) * m


def _vmem_budget_bytes():
    """Generation-aware VMEM budget (v7x has 64 MiB/TC vs 128 MiB on v5e/v6e)."""
    try:
        cap = int(pltpu.get_tpu_info().vmem_capacity_bytes)
    except Exception:
        cap = 64 * 1024 * 1024
    return min(cap // 2, 48 * 1024 * 1024)


def _pick_batch_tile(B, per_batch_bytes, budget_bytes):
    """Largest batch tile whose working set fits the VMEM budget.

    Prefers a divisor of B (no ragged tail).  For awkward B (e.g. prime) it
    returns a non-divisor tile and the callers use a cdiv grid with a masked /
    dropped last tile instead of collapsing to Bt=1.
    """
    bt_max = max(1, (budget_bytes * 3 // 4) // max(per_batch_bytes, 1))
    bt_max = min(bt_max, B)
    if B >= 2:
        bt_max = min(bt_max, (B + 1) // 2)   # keep >=2 grid steps (pipelining / megacore)
    bt_max = max(1, bt_max)
    best_div = 1
    for d in range(bt_max, 0, -1):
        if B % d == 0:
            best_div = d
            break
    if 2 * best_div >= bt_max:
        return best_div
    return bt_max                            # ragged tail, handled by masking


# ----------------------------------------------------------------------------
# Pass 1: per-channel partial sums of the RBF embedding (channel-first compute)
# ----------------------------------------------------------------------------
def stats_kernel(pts_ref, centres_ref, sig2_ref, sum_ref, sq_ref, *,
                 Bt, B, tiles_per_split, needs_mask):
    b = pl.program_id(1)

    @pl.when(b == 0)
    def _():
        sum_ref[...] = jnp.zeros_like(sum_ref)
        sq_ref[...] = jnp.zeros_like(sq_ref)

    pts = pts_ref[...]                                           # (Bt, 3, N)
    valid = None
    if needs_mask:
        tile = pl.program_id(0) * tiles_per_split + b
        row = jax.lax.broadcasted_iota(
            jnp.int32, (pts.shape[0], 1, pts.shape[2]), 0)       # (Bt, 1, N)
        valid = (tile * Bt + row) < B
        pts = jnp.where(valid, pts, 0.0)

    centres = centres_ref[...]                                   # (H, 3)
    sig2 = sig2_ref[...][None]                                   # (1, H, 1)

    d2 = None
    for k in range(3):   # unrolled broadcast-FMA on the VPU; exact (x - c)^2
        diff = pts[:, k:k + 1, :] - centres[:, k:k + 1][None]    # (Bt,1,N)-(1,H,1)
        sq = diff * diff
        d2 = sq if d2 is None else d2 + sq
    phi = jnp.exp(-d2 * sig2)                                    # (Bt, H, N)
    if needs_mask:
        phi = jnp.where(valid, phi, 0.0)

    sum_ref[...] += jnp.sum(jnp.sum(phi, axis=2, keepdims=True), axis=0, keepdims=True)
    sq_ref[...] += jnp.sum(jnp.sum(phi * phi, axis=2, keepdims=True), axis=0, keepdims=True)


# ----------------------------------------------------------------------------
# Pass 2: recompute RBF, apply fused BN affine, single full-tile store
# ----------------------------------------------------------------------------
def normalize_kernel(pts_ref, centres_t_ref, sig2_ref, glob_ref, scale_ref,
                     shift_ref, out_ref):
    scale = scale_ref[...]                                       # (1, H)
    shift = shift_ref[...]                                       # (1, H)
    centres_t = centres_t_ref[...]                               # (3, H)
    sig2 = sig2_ref[...][None]                                   # (1, 1, H)

    pts = pts_ref[...]                                           # (Bt, N, 3)
    d2 = None
    for k in range(3):   # unrolled broadcast-FMA on the VPU
        diff = pts[:, :, k:k + 1] - centres_t[k:k + 1, :][None]  # (Bt,N,1)-(1,1,H)
        sq = diff * diff
        d2 = sq if d2 is None else d2 + sq
    phi = jnp.exp(-d2 * sig2)                                    # (Bt, N, H)
    pts_n = phi * scale[None] + shift[None]                      # (Bt, N, H)

    g_n = glob_ref[...] * scale + shift                          # (G, H)
    g_blk = jnp.broadcast_to(g_n[None], (pts_n.shape[0],) + g_n.shape)

    # G is generally not a multiple of 8, so placing the global rows at L-offset
    # 0 costs one sublane shuffle of the point rows; avoiding it would require
    # changing the (B, L, H) output contract (global rows come first).
    # TODO(synk): emit bf16 here if downstream accepts it (halves output HBM).
    out_ref[...] = jnp.concatenate([g_blk, pts_n], axis=1)
    # Dropout: identity at inference time.


# ----------------------------------------------------------------------------
# Wrapper
# ----------------------------------------------------------------------------
def pcl_embeddings_forward(input_points, global_embedding, rbf_centres,
                           rbf_log_sigmas, bn_gamma, bn_beta, *, eps):
    B, N, D = input_points.shape
    assert D == 3, "input points must be 3-D coordinates"
    G, H = global_embedding.shape
    L = G + N
    f32 = jnp.float32
    fB = 4

    # Glue / hoisted constants (tiny).
    pts = input_points.astype(f32)                        # (B, N, 3)  for pass 2
    pts_t = jnp.transpose(pts, (0, 2, 1))                 # (B, 3, N)  for pass 1
    glob = global_embedding.astype(f32)                   # (G, H)
    centres = rbf_centres.astype(f32)                     # (H, 3)  channel-first
    centres_t = centres.T                                 # (3, H)  channel-last
    sig2 = jnp.exp(2.0 * rbf_log_sigmas.astype(f32))      # (H,)
    sig2_cf = sig2.reshape(H, 1)
    sig2_cl = sig2.reshape(1, H)

    vmem_budget = _vmem_budget_bytes()
    vmem_limit = int(min(vmem_budget + (8 << 20), 64 * 1024 * 1024))  # headroom, <= physical

    H_lane = _round_up(H, 128)
    N_lane = _round_up(N, 128)
    H_sub = _round_up(H, 8)
    N_sub = _round_up(N, 8)
    L_sub = _round_up(L, 8)

    # ---- Pass 1: batch statistics -------------------------------------------
    # Per-batch working set: double-buffered (3->8, N) points tile plus ~3 live
    # (H, N) intermediates (d2 / phi / phi^2).
    p1_per_b = 2 * 8 * N_lane * fB + 3 * H_sub * N_lane * fB
    bt1 = _pick_batch_tile(B, p1_per_b, vmem_budget)
    t1 = pl.cdiv(B, bt1)
    n_split = 2 if t1 >= 2 else 1        # v7x: shard the reduction across both TCs
    tps = pl.cdiv(t1, n_split)
    needs_mask = (n_split * tps * bt1 != B)

    def pts1_map(s, b):
        return (jnp.minimum(s * tps + b, t1 - 1), 0, 0)

    p_sum, p_sq = pl.pallas_call(
        functools.partial(stats_kernel, Bt=bt1, B=B, tiles_per_split=tps,
                          needs_mask=needs_mask),
        out_shape=(jax.ShapeDtypeStruct((n_split, H, 1), f32),
                   jax.ShapeDtypeStruct((n_split, H, 1), f32)),
        grid_spec=pltpu.PrefetchScalarGridSpec(
            num_scalar_prefetch=0,
            grid=(n_split, tps),
            in_specs=[
                pl.BlockSpec((bt1, 3, N), pts1_map),              # points (B, 3, N)
                pl.BlockSpec((H, 3), lambda s, b: (0, 0)),        # RBF centres
                pl.BlockSpec((H, 1), lambda s, b: (0, 0)),        # exp(2*log_sigma)
            ],
            out_specs=(pl.BlockSpec((1, H, 1), lambda s, b: (s, 0, 0)),
                       pl.BlockSpec((1, H, 1), lambda s, b: (s, 0, 0))),
        ),
        compiler_params=pltpu.CompilerParams(
            dimension_semantics=("parallel", "arbitrary"),
            vmem_limit_bytes=vmem_limit),
    )(pts_t, centres, sig2_cf)

    # Tiny finalize in plain XLA: fold in the (identical-per-batch) global rows,
    # then fuse BatchNorm into a single per-channel scale/shift affine.
    count = float(B * L)
    gamma = bn_gamma.astype(f32)
    beta = bn_beta.astype(f32)
    tot = p_sum.sum(axis=0)[:, 0] + float(B) * glob.sum(axis=0)          # (H,)
    tot2 = p_sq.sum(axis=0)[:, 0] + float(B) * jnp.sum(glob * glob, axis=0)
    mean = tot / count
    # TODO(synk): single-pass E[x^2] - mean^2 variance; fine for phi in (0, 1].
    var = tot2 / count - mean * mean
    inv = jax.lax.rsqrt(jnp.maximum(var, 0.0) + eps)
    scale = (gamma * inv).reshape(1, H)
    shift = (beta - mean * gamma * inv).reshape(1, H)

    # ---- Pass 2: recompute + normalize + single (Bt, L, H) store -------------
    # Per-batch working set: double-buffered (L, H) output tile, double-buffered
    # (N, 3->128) points tile, ~3 live (N, H) intermediates.
    p2_per_b = (2 * L_sub * H_lane * fB + 2 * N_sub * 128 * fB
                + 3 * N_sub * H_lane * fB)
    bt2 = _pick_batch_tile(B, p2_per_b, vmem_budget)

    out = pl.pallas_call(
        normalize_kernel,
        out_shape=jax.ShapeDtypeStruct((B, L, H), f32),
        grid_spec=pltpu.PrefetchScalarGridSpec(
            num_scalar_prefetch=0,
            grid=(pl.cdiv(B, bt2),),
            in_specs=[
                pl.BlockSpec((bt2, N, 3), lambda b: (b, 0, 0)),   # points (B, N, 3)
                pl.BlockSpec((3, H), lambda b: (0, 0)),           # centres^T
                pl.BlockSpec((1, H), lambda b: (0, 0)),           # exp(2*log_sigma)
                pl.BlockSpec((G, H), lambda b: (0, 0)),           # global embedding
                pl.BlockSpec((1, H), lambda b: (0, 0)),           # fused BN scale
                pl.BlockSpec((1, H), lambda b: (0, 0)),           # fused BN shift
            ],
            out_specs=pl.BlockSpec((bt2, L, H), lambda b: (b, 0, 0)),
        ),
        compiler_params=pltpu.CompilerParams(
            dimension_semantics=("parallel",),                    # megacore-shardable
            vmem_limit_bytes=vmem_limit),
    )(pts, centres_t, sig2_cl, glob, scale, shift)
    return out


# ----------------------------------------------------------------------------
# Pure-JAX reference for verification
# ----------------------------------------------------------------------------
def pcl_embeddings_reference(input_points, global_embedding, rbf_centres,
                             rbf_log_sigmas, bn_gamma, bn_beta, *, eps):
    B, N, _ = input_points.shape
    x = input_points.reshape(B * N, 3)
    d2 = jnp.sum((x[:, None, :] - rbf_centres[None, :, :]) ** 2, axis=-1)
    phi = jnp.exp(-d2 * jnp.exp(rbf_log_sigmas)[None, :] ** 2)
    emb = phi.reshape(B, N, -1)
    glob = jnp.broadcast_to(global_embedding[None], (B,) + global_embedding.shape)
    emb = jnp.concatenate([glob, emb], axis=1)
    mean = emb.mean(axis=(0, 1))
    var = ((emb - mean) ** 2).mean(axis=(0, 1))
    return (emb - mean) / jnp.sqrt(var + eps) * bn_gamma + bn_beta


if __name__ == "__main__":
    # config: global_attention=4, hidden_size=32, batch_norm_eps=1e-5
    B, N = 2, 8
    G, H = 4, 32
    EPS = 1e-5

    key = jax.random.PRNGKey(0)
    k_pts, k_glob, k_cent = jax.random.split(key, 3)

    input_points = jax.random.normal(k_pts, (B, N, 3), dtype=jnp.float32)
    global_embedding = jax.random.normal(k_glob, (G, H), dtype=jnp.float32)  # nn.init.normal_
    rbf_centres = jax.random.normal(k_cent, (H, 3), dtype=jnp.float32)       # RBF centres
    rbf_log_sigmas = jnp.zeros((H,), dtype=jnp.float32)                      # RBF log_sigmas
    bn_gamma = jnp.ones((H,), dtype=jnp.float32)                             # BN weight
    bn_beta = jnp.zeros((H,), dtype=jnp.float32)                             # BN bias

    out = pcl_embeddings_forward(
        input_points, global_embedding, rbf_centres, rbf_log_sigmas,
        bn_gamma, bn_beta, eps=EPS)
    out = jax.block_until_ready(out)

    ref = pcl_embeddings_reference(
        input_points, global_embedding, rbf_centres, rbf_log_sigmas,
        bn_gamma, bn_beta, eps=EPS)

    assert out.shape == (B, G + N, H), out.shape
    assert jnp.allclose(out, ref, atol=1e-4, rtol=1e-4), float(jnp.max(jnp.abs(out - ref)))
    print("KERNEL_OK")
</pallas_src>

<mosaic_0001>
module attributes {stable_mosaic.version = 11 : i64} {
  func.func @stats_kernel(%arg0: i32, %arg1: i32, %arg2: memref<1x3x8xf32, #tpu.memory_space<vmem>>, %arg3: memref<32x3xf32, #tpu.memory_space<vmem>>, %arg4: memref<32x1xf32, #tpu.memory_space<vmem>>, %arg5: memref<1x32x1xf32, #tpu.memory_space<vmem>>, %arg6: memref<1x32x1xf32, #tpu.memory_space<vmem>>) attributes {dimension_semantics = [#tpu.dimension_semantics<parallel>, #tpu.dimension_semantics<arbitrary>], iteration_bounds = array<i64: 2, 1>, scalar_prefetch = 0 : i64, scratch_operands = 0 : i64, tpu.core_type = #tpu.core_type<tc>, window_params = [{transform_indices = @transform_0, window_bounds = array<i64: 1, 3, 8>}, {pipeline_mode = #tpu.pipeline_mode<synchronous>, transform_indices = @transform_1, window_bounds = array<i64: 32, 3>}, {pipeline_mode = #tpu.pipeline_mode<synchronous>, transform_indices = @transform_2, window_bounds = array<i64: 32, 1>}, {transform_indices = @transform_3, window_bounds = array<i64: 1, 32, 1>}, {transform_indices = @transform_4, window_bounds = array<i64: 1, 32, 1>}]} {
    %c0_i32 = arith.constant 0 : i32
    %0 = arith.cmpi eq, %arg1, %c0_i32 : i32
    %1 = arith.extui %0 : i1 to i32
    %c0_i32_0 = arith.constant 0 : i32
    %2 = arith.cmpi ne, %1, %c0_i32_0 : i32
    scf.if %2 {
      %cst_23 = arith.constant 0.000000e+00 : f32
      %50 = vector.broadcast %cst_23 : f32 to vector<1x32x1xf32>
      %c0_24 = arith.constant 0 : index
      %c0_25 = arith.constant 0 : index
      %c0_26 = arith.constant 0 : index
      %51 = vector.load %arg5[%c0_24, %c0_25, %c0_26] : memref<1x32x1xf32, #tpu.memory_space<vmem>>, vector<1x32x1xf32>
      tpu.vector_store %arg5[%c0_24, %c0_25, %c0_26], %50 {strides = array<i32>} : memref<1x32x1xf32, #tpu.memory_space<vmem>>, vector<1x32x1xf32>,
      %cst_27 = arith.constant 0.000000e+00 : f32
      %52 = vector.broadcast %cst_27 : f32 to vector<1x32x1xf32>
      %c0_28 = arith.constant 0 : index
      %c0_29 = arith.constant 0 : index
      %c0_30 = arith.constant 0 : index
      %53 = vector.load %arg6[%c0_28, %c0_29, %c0_30] : memref<1x32x1xf32, #tpu.memory_space<vmem>>, vector<1x32x1xf32>
      tpu.vector_store %arg6[%c0_28, %c0_29, %c0_30], %52 {strides = array<i32>} : memref<1x32x1xf32, #tpu.memory_space<vmem>>, vector<1x32x1xf32>,
    } else {
    }
    %c0 = arith.constant 0 : index
    %c0_1 = arith.constant 0 : index
    %c0_2 = arith.constant 0 : index
    %3 = vector.load %arg2[%c0, %c0_1, %c0_2] : memref<1x3x8xf32, #tpu.memory_space<vmem>>, vector<1x3x8xf32>
    %c0_3 = arith.constant 0 : index
    %c0_4 = arith.constant 0 : index
    %4 = vector.load %arg3[%c0_3, %c0_4] : memref<32x3xf32, #tpu.memory_space<vmem>>, vector<32x3xf32>
    %c0_5 = arith.constant 0 : index
    %c0_6 = arith.constant 0 : index
    %5 = vector.load %arg4[%c0_5, %c0_6] : memref<32x1xf32, #tpu.memory_space<vmem>>, vector<32x1xf32>
    %6 = vector.shape_cast %5 : vector<32x1xf32> to vector<1x32x1xf32>
    %7 = vector.extract_strided_slice %3 {offsets = [0, 0, 0], sizes = [1, 1, 8], strides = [1, 1, 1]} : vector<1x3x8xf32> to vector<1x1x8xf32>
    %8 = vector.extract_strided_slice %4 {offsets = [0, 0], sizes = [32, 1], strides = [1, 1]} : vector<32x3xf32> to vector<32x1xf32>
    %9 = vector.shape_cast %8 : vector<32x1xf32> to vector<1x32x1xf32>
    %10 = vector.broadcast %7 : vector<1x1x8xf32> to vector<1x32x8xf32>
    %11 = vector.broadcast %9 : vector<1x32x1xf32> to vector<1x32x8xf32>
    %12 = arith.subf %10, %11 : vector<1x32x8xf32>
    %13 = arith.mulf %12, %12 : vector<1x32x8xf32>
    %14 = vector.extract_strided_slice %3 {offsets = [0, 1, 0], sizes = [1, 1, 8], strides = [1, 1, 1]} : vector<1x3x8xf32> to vector<1x1x8xf32>
    %15 = vector.extract_strided_slice %4 {offsets = [0, 1], sizes = [32, 1], strides = [1, 1]} : vector<32x3xf32> to vector<32x1xf32>
    %16 = vector.shape_cast %15 : vector<32x1xf32> to vector<1x32x1xf32>
    %17 = vector.broadcast %14 : vector<1x1x8xf32> to vector<1x32x8xf32>
    %18 = vector.broadcast %16 : vector<1x32x1xf32> to vector<1x32x8xf32>
    %19 = arith.subf %17, %18 : vector<1x32x8xf32>
    %20 = arith.mulf %19, %19 : vector<1x32x8xf32>
    %21 = arith.addf %13, %20 : vector<1x32x8xf32>
    %22 = vector.extract_strided_slice %3 {offsets = [0, 2, 0], sizes = [1, 1, 8], strides = [1, 1, 1]} : vector<1x3x8xf32> to vector<1x1x8xf32>
    %23 = vector.extract_strided_slice %4 {offsets = [0, 2], sizes = [32, 1], strides = [1, 1]} : vector<32x3xf32> to vector<32x1xf32>
    %24 = vector.shape_cast %23 : vector<32x1xf32> to vector<1x32x1xf32>
    %25 = vector.broadcast %22 : vector<1x1x8xf32> to vector<1x32x8xf32>
    %26 = vector.broadcast %24 : vector<1x32x1xf32> to vector<1x32x8xf32>
    %27 = arith.subf %25, %26 : vector<1x32x8xf32>
    %28 = arith.mulf %27, %27 : vector<1x32x8xf32>
    %29 = arith.addf %21, %28 : vector<1x32x8xf32>
    %cst = arith.constant 0.000000e+00 : f32
    %30 = vector.broadcast %cst : f32 to vector<1x32x8xf32>
    %31 = arith.subf %30, %29 : vector<1x32x8xf32>
    %32 = vector.broadcast %6 : vector<1x32x1xf32> to vector<1x32x8xf32>
    %33 = arith.mulf %31, %32 : vector<1x32x8xf32>
    %34 = math.exp %33 : vector<1x32x8xf32>
    %c0_7 = arith.constant 0 : index
    %c0_8 = arith.constant 0 : index
    %c0_9 = arith.constant 0 : index
    %35 = vector.load %arg5[%c0_7, %c0_8, %c0_9] : memref<1x32x1xf32, #tpu.memory_space<vmem>>, vector<1x32x1xf32>
    %cst_10 = arith.constant dense<0.000000e+00> : vector<1x32xf32>
    %36 = vector.multi_reduction <add>, %34, %cst_10 [2] : vector<1x32x8xf32> to vector<1x32xf32>
    %37 = vector.shape_cast %36 : vector<1x32xf32> to vector<1x32x1xf32>
    %cst_11 = arith.constant dense<0.000000e+00> : vector<32x1xf32>
    %38 = vector.multi_reduction <add>, %37, %cst_11 [0] : vector<1x32x1xf32> to vector<32x1xf32>
    %39 = vector.shape_cast %38 : vector<32x1xf32> to vector<1x32x1xf32>
    %40 = arith.addf %35, %39 : vector<1x32x1xf32>
    %c0_12 = arith.constant 0 : index
    %c0_13 = arith.constant 0 : index
    %c0_14 = arith.constant 0 : index
    %41 = vector.load %arg5[%c0_12, %c0_13, %c0_14] : memref<1x32x1xf32, #tpu.memory_space<vmem>>, vector<1x32x1xf32>
    tpu.vector_store %arg5[%c0_12, %c0_13, %c0_14], %40 {strides = array<i32>} : memref<1x32x1xf32, #tpu.memory_space<vmem>>, vector<1x32x1xf32>,
    %c0_15 = arith.constant 0 : index
    %c0_16 = arith.constant 0 : index
    %c0_17 = arith.constant 0 : index
    %42 = vector.load %arg6[%c0_15, %c0_16, %c0_17] : memref<1x32x1xf32, #tpu.memory_space<vmem>>, vector<1x32x1xf32>
    %43 = arith.mulf %34, %34 : vector<1x32x8xf32>
    %cst_18 = arith.constant dense<0.000000e+00> : vector<1x32xf32>
    %44 = vector.multi_reduction <add>, %43, %cst_18 [2] : vector<1x32x8xf32> to vector<1x32xf32>
    %45 = vector.shape_cast %44 : vector<1x32xf32> to vector<1x32x1xf32>
    %cst_19 = arith.constant dense<0.000000e+00> : vector<32x1xf32>
    %46 = vector.multi_reduction <add>, %45, %cst_19 [0] : vector<1x32x1xf32> to vector<32x1xf32>
    %47 = vector.shape_cast %46 : vector<32x1xf32> to vector<1x32x1xf32>
    %48 = arith.addf %42, %47 : vector<1x32x1xf32>
    %c0_20 = arith.constant 0 : index
    %c0_21 = arith.constant 0 : index
    %c0_22 = arith.constant 0 : index
    %49 = vector.load %arg6[%c0_20, %c0_21, %c0_22] : memref<1x32x1xf32, #tpu.memory_space<vmem>>, vector<1x32x1xf32>
    tpu.vector_store %arg6[%c0_20, %c0_21, %c0_22], %48 {strides = array<i32>} : memref<1x32x1xf32, #tpu.memory_space<vmem>>, vector<1x32x1xf32>,
    return
  }
  func.func @transform_0(%arg0: i32, %arg1: i32) -> (i32, i32, i32) {
    %c1_i32 = arith.constant 1 : i32
    %0 = arith.muli %arg0, %c1_i32 : i32
    %1 = arith.addi %0, %arg1 : i32
    %c1_i32_0 = arith.constant 1 : i32
    %2 = arith.minsi %1, %c1_i32_0 : i32
    %c0_i32 = arith.constant 0 : i32
    %c0_i32_1 = arith.constant 0 : i32
    %c0_i32_2 = arith.constant 0 : i32
    return %2, %c0_i32, %c0_i32_1 : i32, i32, i32
  }
  func.func @transform_1(%arg0: i32, %arg1: i32) -> (i32, i32) {
    %c0_i32 = arith.constant 0 : i32
    %c0_i32_0 = arith.constant 0 : i32
    %c0_i32_1 = arith.constant 0 : i32
    return %c0_i32, %c0_i32_0 : i32, i32
  }
  func.func @transform_2(%arg0: i32, %arg1: i32) -> (i32, i32) {
    %c0_i32 = arith.constant 0 : i32
    %c0_i32_0 = arith.constant 0 : i32
    %c0_i32_1 = arith.constant 0 : i32
    return %c0_i32, %c0_i32_0 : i32, i32
  }
  func.func @transform_3(%arg0: i32, %arg1: i32) -> (i32, i32, i32) {
    %c0_i32 = arith.constant 0 : i32
    %c0_i32_0 = arith.constant 0 : i32
    %c0_i32_1 = arith.constant 0 : i32
    return %arg0, %c0_i32, %c0_i32_0 : i32, i32, i32
  }
  func.func @transform_4(%arg0: i32, %arg1: i32) -> (i32, i32, i32) {
    %c0_i32 = arith.constant 0 : i32
    %c0_i32_0 = arith.constant 0 : i32
    %c0_i32_1 = arith.constant 0 : i32
    return %arg0, %c0_i32, %c0_i32_0 : i32, i32, i32
  }
}

</mosaic_0001>

<bundles_post_ra>
// kernel: tpu_custom_call.1
= control target key start
LH: loop header
LB: loop body
LE: loop exit
PB: predicated region body
PF: predicated region fallthrough
CT: control target
= control target key end

     0   :  { %s667_s15 = smov 0   ;;  %s669_s16 = smov 0   ;;  %s786_s0 = inlined_call_operand.vmem [shape: f32[2,3,8], index: 0, kind: input, shape index: {}]   ;;  %s787_s1 = inlined_call_operand.vmem [shape: f32[32,3], index: 1, kind: input, shape index: {}]   ;;  %s788_s2 = inlined_call_operand.vmem [shape: f32[32,1], index: 2, kind: input, shape index: {}]   ;;  %s789_s3 = inlined_call_operand.vmem [shape: f32[2,32,1], index: 3, kind: output, shape index: {0}]   ;;  %s790_s4 = inlined_call_operand.vmem [shape: f32[2,32,1], index: 4, kind: output, shape index: {1}]  }
   0x1   :  { %s671_s17 = smov 0  }
   0x2 LB: > { %s27_s18 = sadd.s32 1, %s632_s16  ;;  %p557_p0 = scmp.ge.s32.totalorder %s636_s17, 1  ;;  %s636_s17 = sphi %s671_s17, %s15_s17   ;;  %s632_s16 = sphi %s669_s16, %s792_s16   ;;  %s628_s15 = sphi %s667_s15, %s791_s15  }
   0x3   : > { %p29_p1 = scmp.ge.s32.totalorder %s27_s18, 2  ;;  %p188_p2 = scmp.lt.s32.totalorder %s636_s17, 3 }
   0x5   : > { %s794_s18 = smov (%p29_p1, %s27_s18), 0  ;;  %p189_p3 = pnand %p557_p0, %p188_p2 }
   0x6   : > { %v257_v0 = vld [vmem:[%s787_s1 + $0x10] sm:$0xff] (!%p189_p3)  ;;  %v255_v1 = vld [vmem:[%s787_s1] sm:$0xff] (!%p189_p3)  ;;  %v638_v2 = vmov (!%p189_p3), 0   ;;  %p222_p4 = scmp.lt.s32.totalorder (!%p189_p3), %s628_s15, 1  ;;  %v258_v3 = vld [vmem:[%s787_s1 + $0x18] sm:$0xff] (!%p189_p3)  ;;  %v639_v5 = vmov (!%p189_p3), 1   ;;  %v263_v12 = vlaneseq (!%p189_p3) }
   0x7   : > { %192 = sbr.rel (%p189_p3) target bundleno = 340 (0x154), region = 32  ;;  %599 = vset.pattern.permute.xlu1 (!%p189_p3), %v638_v2  ;;  %598 = vset.pattern.permute.xlu0 (!%p189_p3), %v638_v2  ;;  %v256_v4 = vld [vmem:[%s787_s1 + $0x8] sm:$0xff] (!%p189_p3)  ;;  %v640_v6 = vmov (!%p189_p3), 2   ;;  %v259_v7 = vld [vmem:[%s788_s2] sm:$0xff] (!%p189_p3)  ;;  %v262_v8 = vld [vmem:[%s788_s2 + $0x18] sm:$0xff] (!%p189_p3)  ;;  %vm245_vm0 = vcmask (!%p189_p3), 7168  }
   0x8   : > { %279 = vperm.xlu1 (!%p189_p3), %599, %v257_v0   ;;  %269 = vperm.xlu0 (!%p189_p3), %598, %v255_v1   ;;  %v260_v9 = vld [vmem:[%s788_s2 + $0x8] sm:$0xff] (!%p189_p3)  ;;  %v261_v10 = vld [vmem:[%s788_s2 + $0x10] sm:$0xff] (!%p189_p3)  ;;  %v641_v11 = vmov (!%p189_p3), 0.0   ;;  %v264_v15 = vshrl.u32 (!%p189_p3), %v263_v12, 7  ;;  %vm399_vm1 = vcmask (!%p189_p3), 64512  }
   0xa   : > { %v297_v18 = vsub.s32 (!%p189_p3), 1, %v264_v15  ;;  %v265_v20 = vsub.s32 (!%p189_p3), 0, %v264_v15  ;;  %v329_v24 = vsub.s32 (!%p189_p3), 2, %v264_v15 }
   0xc   : > { %284 = vperm.xlu1 (!%p189_p3), %599, %v258_v3   ;;  %274 = vperm.xlu0 (!%p189_p3), %598, %v256_v4  }
   0xe   : > { %s796_s15 = smov (!%p222_p4, %s628_s15), 1 }
   0xf   : > { %s700_s27 = scalar_select %p222_p4, %s796_s15, 1 }
  0x10   : > { %601 = vset.pattern.permute.xlu1 %v639_v5  ;;  %600 = vset.pattern.permute.xlu0 %v639_v5  ;;  %s568_s10 = sshll.u32 %s796_s15, 5 }
  0x11   : > { %304 = vperm.xlu1 %601, %v256_v4   ;;  %300 = vperm.xlu0 %600, %v255_v1   ;;  %s718_s13 = scalar_lea.vmem %s789_s3, %s568_s10  ;;  %s723_s20 = scalar_lea.vmem %s790_s4, %s568_s10 }
  0x12   : > { %246 = vst.msk [vmem:[%s718_s13] sm:$0xff] %vm245_vm0, %v641_v11  ;;  %247 = vst.msk [vmem:[%s718_s13 + $0x8] sm:$0xff] %vm245_vm0, %v641_v11  ;;  %s561_s15 = sshll.u32 %s700_s27, 2 }
  0x13   : > { %248 = vst.msk [vmem:[%s718_s13 + $0x10] sm:$0xff] %vm245_vm0, %v641_v11  ;;  %249 = vst.msk [vmem:[%s718_s13 + $0x18] sm:$0xff] %vm245_vm0, %v641_v11  ;;  %s227_s23 = scalar_lea.vmem %s786_s0, %s561_s15 }
  0x14   : > { %250 = vst.msk [vmem:[%s723_s20] sm:$0xff] %vm245_vm0, %v641_v11  ;;  %251 = vst.msk [vmem:[%s723_s20 + $0x8] sm:$0xff] %vm245_vm0, %v641_v11  ;;  %v254_v19 = vld [vmem:[%s227_s23] sm:$0x7] }
  0x15   : > { %308 = vperm.xlu1 %601, %v257_v0   ;;  %312 = vperm.xlu0 %600, %v258_v3   ;;  %252 = vst.msk [vmem:[%s723_s20 + $0x10] sm:$0xff] %vm245_vm0, %v641_v11  ;;  %253 = vst.msk [vmem:[%s723_s20 + $0x18] sm:$0xff] %vm245_vm0, %v641_v11  ;;  %v298_v22 = vrot.slane %v254_v19, %v297_v18  ;;  %v266_v25 = vrot.slane %v254_v19, %v265_v20 }
  0x16   : > { %v330_v30 = vrot.slane %v254_v19, %v329_v24 }
  0x19   : > { %602 = vset.pattern.permute.xlu1 %v640_v6  ;;  %603 = vset.pattern.permute.xlu0 %v640_v6 }
  0x1a   : > { %332 = vperm.xlu1 %602, %v255_v1   ;;  %336 = vperm.xlu0 %603, %v256_v4  }
  0x1e   : > { %340 = vperm.xlu1 %602, %v257_v0   ;;  %604 = vset.pattern.permute.xlu0 %v638_v2 }
  0x1f   : > { %365 = vperm.xlu0 %604, %v259_v7  }
  0x22   : > { %344 = vperm.xlu1 %602, %v258_v3  }
  0x23   : > { %380 = vperm.xlu0 %604, %v262_v8  }
  0x26   : > { %605 = vset.pattern.permute.xlu1 %v638_v2 }
  0x27   : > { %370 = vperm.xlu1 %605, %v260_v9  }
  0x2b   : > { %375 = vperm.xlu1 %605, %v261_v10  }
  0x87   : > { %v280_v13 = vpop.permute.xlu1 %279  ;;  %v270_v14 = vpop.permute.xlu0 %269 }
  0x88   : > { %v287_v29 = vsub.f32 %v266_v25, %v270_v14  ;;  %v289_v44 = vsub.f32 %v266_v25, %v280_v13 }
  0x8a   : > { %v291_v36 = vmul.f32 %v287_v29, %v287_v29  ;;  %v293_v56 = vmul.f32 %v289_v44, %v289_v44 }
  0x8b   : > { %v285_v16 = vpop.permute.xlu1 %284  ;;  %v275_v17 = vpop.permute.xlu0 %274 }
  0x8c   : > { %v288_v33 = vsub.f32 %v266_v25, %v275_v17  ;;  %v290_v48 = vsub.f32 %v266_v25, %v285_v16 }
  0x8e   : > { %v292_v45 = vmul.f32 %v288_v33, %v288_v33  ;;  %v294_v60 = vmul.f32 %v290_v48, %v290_v48  ;;  %v395_v33 = vld [vmem:[%s718_s13] sm:$0xff] }
  0x90   : > { %v305_v21 = vpop.permute.xlu1 %304  ;;  %v301_v23 = vpop.permute.xlu0 %300 }
  0x91   : > { %v315_v26 = vsub.f32 %v298_v22, %v301_v23  ;;  %v316_v31 = vsub.f32 %v298_v22, %v305_v21 }
  0x93   : > { %v319_v32 = vmul.f32 %v315_v26, %v315_v26  ;;  %v320_v39 = vmul.f32 %v316_v31, %v316_v31 }
  0x94   : > { %v309_v27 = vpop.permute.xlu1 %308  ;;  %v313_v28 = vpop.permute.xlu0 %312 }
  0x95   : > { %v317_v40 = vsub.f32 %v298_v22, %v309_v27  ;;  %v323_v41 = vadd.f32 %v319_v32, %v291_v36  ;;  %v318_v42 = vsub.f32 %v298_v22, %v313_v28  ;;  %v324_v51 = vadd.f32 %v320_v39, %v292_v45  ;;  %v396_v36 = vld [vmem:[%s718_s13 + $0x8] sm:$0xff]  ;;  %v398_v39 = vld [vmem:[%s718_s13 + $0x18] sm:$0xff] }
  0x96   : > { %v426_v45 = vld [vmem:[%s723_s20 + $0x8] sm:$0xff] }
  0x97   : > { %v321_v52 = vmul.f32 %v317_v40, %v317_v40  ;;  %v322_v54 = vmul.f32 %v318_v42, %v318_v42  ;;  %v397_v40 = vld [vmem:[%s718_s13 + $0x10] sm:$0xff] }
  0x99   : > { %v333_v34 = vpop.permute.xlu1 %332  ;;  %v337_v35 = vpop.permute.xlu0 %336  ;;  %v325_v63 = vadd.f32 %v321_v52, %v293_v56  ;;  %v326_v0 = vadd.f32 %v322_v54, %v294_v60  ;;  %v427_v52 = vld [vmem:[%s723_s20 + $0x10] sm:$0xff] }
  0x9a   : > { %v347_v37 = vsub.f32 %v330_v30, %v333_v34  ;;  %v348_v38 = vsub.f32 %v330_v30, %v337_v35 }
  0x9c   : > { %v351_v43 = vmul.f32 %v347_v37, %v347_v37  ;;  %v352_v46 = vmul.f32 %v348_v38, %v348_v38 }
  0x9d   : > { %v341_v47 = vpop.permute.xlu1 %340 }
  0x9e   : > { %v349_v49 = vsub.f32 %v330_v30, %v341_v47  ;;  %v355_v50 = vadd.f32 %v351_v43, %v323_v41  ;;  %v366_v53 = vpop.permute.xlu0 %365  ;;  %v356_v59 = vadd.f32 %v352_v46, %v324_v51  ;;  %v425_v46 = vld [vmem:[%s723_s20] sm:$0xff]  ;;  %v428_v51 = vld [vmem:[%s723_s20 + $0x18] sm:$0xff] }
  0xa0   : > { %v359_v55 = vsub.f32 0.0, %v355_v50  ;;  %v353_v57 = vmul.f32 %v349_v49, %v349_v49  ;;  %v360_v3 = vsub.f32 0.0, %v356_v59 }
  0xa1   : > { %v345_v58 = vpop.permute.xlu1 %344 }
  0xa2   : > { %v350_v61 = vsub.f32 %v330_v30, %v345_v58  ;;  %v383_v62 = vmul.f32 %v366_v53, %v359_v55  ;;  %v357_v4 = vadd.f32 %v353_v57, %v325_v63  ;;  %v381_v10 = vpop.permute.xlu0 %380 }
  0xa4   : > { %v354_v1 = vmul.f32 %v350_v61, %v350_v61  ;;  %v387_v2 = vmul.f32 1.442695, %v383_v62  ;;  %v361_v11 = vsub.f32 0.0, %v357_v4 }
  0xa6   : > { %606 = vpow2.f32 %v387_v2  ;;  %v371_v5 = vpop.permute.xlu1 %370  ;;  %v358_v6 = vadd.f32 %v354_v1, %v326_v0 }
  0xa7   : > { %v384_v7 = vmul.f32 %v371_v5, %v360_v3 }
  0xa8   : > { %v362_v8 = vsub.f32 0.0, %v358_v6 }
  0xa9   : > { %v389_v9 = vmul.f32 1.442695, %v384_v7 }
  0xaa   : > { %v386_v12 = vmul.f32 %v381_v10, %v362_v8  ;;  %v376_v13 = vpop.permute.xlu1 %375 }
  0xab   : > { %608 = vpow2.f32 %v389_v9  ;;  %v385_v14 = vmul.f32 %v376_v13, %v361_v11 }
  0xac   : > { %v393_v15 = vmul.f32 1.442695, %v386_v12 }
  0xad   : > { %v391_v16 = vmul.f32 1.442695, %v385_v14 }
  0xae   : > { %610 = vpow2.f32 %v393_v15 }
  0xaf   : > { %612 = vpow2.f32 %v391_v16 }
  0xb0   : > { %v607_v17 = vpop.eup %606 }
  0xb1   : > { %v400_v18 = vsel %vm399_vm1, %v607_v17, 0.0  ;;  %v429_v26 = vmul.f32 %v607_v17, %v607_v17 }
  0xb2   : > { %401 = vadd.xlane.f32.xlu1 %v400_v18 }
  0xb3   : > { %v433_v29 = vsel %vm399_vm1, %v429_v26, 0.0 }
  0xb5   : > { %v609_v19 = vpop.eup %608 }
  0xb6   : > { %v403_v20 = vsel %vm399_vm1, %v609_v19, 0.0  ;;  %v430_v24 = vmul.f32 %v609_v19, %v609_v19 }
  0xb7   : > { %404 = vadd.xlane.f32.xlu0 %v403_v20 }
  0xb8   : > { %v611_v21 = vpop.eup %610  ;;  %v436_v27 = vsel %vm399_vm1, %v430_v24, 0.0 }
  0xb9   : > { %v613_v22 = vpop.eup %612  ;;  %v409_v23 = vsel %vm399_vm1, %v611_v21, 0.0  ;;  %v432_v28 = vmul.f32 %v611_v21, %v611_v21 }
  0xba   : > { %410 = vadd.xlane.f32.xlu1 %v409_v23  ;;  %v406_v25 = vsel %vm399_vm1, %v613_v22, 0.0  ;;  %v431_v30 = vmul.f32 %v613_v22, %v613_v22 }
  0xbb   : > { %407 = vadd.xlane.f32.xlu0 %v406_v25  ;;  %v442_v31 = vsel %vm399_vm1, %v432_v28, 0.0 }
  0xbc   : > { %v439_v32 = vsel %vm399_vm1, %v431_v30, 0.0 }
  0xbe   : > { %437 = vadd.xlane.f32.xlu1 %v436_v27 }
  0xbf   : > { %434 = vadd.xlane.f32.xlu0 %v433_v29 }
  0xc2   : > { %443 = vadd.xlane.f32.xlu1 %v442_v31 }
  0xc3   : > { %440 = vadd.xlane.f32.xlu0 %v439_v32 }
 0x13f   : > { %v402_v34 = vpop.xlane.xlu1 %401 }
 0x140   : > { %v416_v35 = vadd.f32 %v402_v34, %v395_v33 }
 0x142   : > { %421 = vst.msk [vmem:[%s718_s13] sm:$0xff] %vm245_vm0, %v416_v35 }
 0x144   : > { %v405_v37 = vpop.xlane.xlu0 %404 }
 0x145   : > { %v417_v38 = vadd.f32 %v405_v37, %v396_v36 }
 0x147   : > { %422 = vst.msk [vmem:[%s718_s13 + $0x8] sm:$0xff] %vm245_vm0, %v417_v38  ;;  %v411_v41 = vpop.xlane.xlu1 %410 }
 0x148   : > { %v419_v42 = vadd.f32 %v411_v41, %v398_v39  ;;  %v408_v43 = vpop.xlane.xlu0 %407 }
 0x149   : > { %v418_v44 = vadd.f32 %v408_v43, %v397_v40 }
 0x14a   : > { %424 = vst.msk [vmem:[%s718_s13 + $0x18] sm:$0xff] %vm245_vm0, %v419_v42 }
 0x14b   : > { %423 = vst.msk [vmem:[%s718_s13 + $0x10] sm:$0xff] %vm245_vm0, %v418_v44  ;;  %v438_v47 = vpop.xlane.xlu1 %437 }
 0x14c   : > { %v450_v48 = vadd.f32 %v438_v47, %v426_v45  ;;  %v435_v49 = vpop.xlane.xlu0 %434 }
 0x14d   : > { %v449_v50 = vadd.f32 %v435_v49, %v425_v46 }
 0x14e   : > { %454 = vst.msk [vmem:[%s723_s20 + $0x8] sm:$0xff] %vm245_vm0, %v450_v48 }
 0x14f   : > { %453 = vst.msk [vmem:[%s723_s20] sm:$0xff] %vm245_vm0, %v449_v50  ;;  %v444_v53 = vpop.xlane.xlu1 %443 }
 0x150   : > { %v452_v54 = vadd.f32 %v444_v53, %v428_v51  ;;  %v441_v55 = vpop.xlane.xlu0 %440 }
 0x151   : > { %v451_v56 = vadd.f32 %v441_v55, %v427_v52 }
 0x152   : > { %456 = vst.msk [vmem:[%s723_s20 + $0x18] sm:$0xff] %vm245_vm0, %v452_v54 }
 0x153   : > { %455 = vst.msk [vmem:[%s723_s20 + $0x10] sm:$0xff] %vm245_vm0, %v451_v56 }
 0x154 PF: > { %s15_s17 = sadd.s32 1, %s636_s17   ;;  %s791_s15 = smov %s632_s16 }
 0x155   : > { %p12_p5 = scmp.ge.s32.totalorder %s15_s17, 4   ;;  %s792_s16 = smov %s794_s18 }
 0x157   :  { %14 = sbr.rel (!%p12_p5) target bundleno = 2 (0x2), region = 78 }

</bundles_post_ra>
